<compile_context>
chip_gen: v6e
topology: v6e:2x2x1
jax: 0.10.0
libtpu: 0.0.40
codegen_flags: <defaults>
</compile_context>

<pallas_src>
import functools
from typing import Sequence, Union

import numpy as np
import jax
import jax.numpy as jnp
from jax.experimental import pallas as pl
from jax.experimental.pallas import tpu as pltpu


def _center_crop_keep_shape_kernel(mask_ref, x_ref, o_ref, *, shift):
    """mask_ref (VMEM): (1, H*W) grid-invariant paste-band mask (0/1), resident
    x_ref    (VMEM): (TR, H*W) flattened input rows (one row = one image plane)
    o_ref    (VMEM): (TR, H*W) flattened output rows
    Static: shift = (H*W - dh*W - dw) % (H*W), the fused crop-vs-paste shift.
    """
    x = x_ref[...]
    # out[h, w] = img[h + dh, w + dw] inside the paste band.  In the flattened
    # layout that is one lane shift by dh*W + dw; wrapped elements always land
    # outside the paste band and are zeroed by the mask.
    if shift:
        x = pltpu.roll(x, shift, axis=1)
    band = jnp.broadcast_to(mask_ref[...] > 0, x.shape)
    # keep a select (not mask-multiply) so NaN/Inf outside the band stay exact 0
    o_ref[...] = jnp.where(band, x, jnp.zeros_like(x))


def random_center_crop_pallas(img, crop_h, crop_w):
    """CenterCrop to (crop_h, crop_w), paste back centered into zeros, keeping
    the full (..., H, W) shape.  crop_h/crop_w are host ints (host RNG)."""
    *lead, H, W = img.shape
    num_rows = int(np.prod(lead)) if lead else 1
    HW = H * W

    # paste-back offsets (remain_shape branch) + torchvision CenterCrop offsets
    start_h = (H - crop_h) // 2
    start_w = (W - crop_w) // 2
    crop_top = int(round((H - crop_h) / 2.0))
    crop_left = int(round((W - crop_w) / 2.0))
    dh = crop_top - start_h                      # in {0, 1}
    dw = crop_left - start_w                     # in {0, 1}
    shift = (HW - (dh * W + dw)) % HW            # fused roll amount (static)

    # Grid-invariant paste-band mask, built once per call (O(H*W) work, a small
    # fraction of the image bytes) and DMA'd once per core as a resident block.
    pos = jnp.arange(HW, dtype=jnp.int32)
    row = pos // W
    col = pos - row * W
    mask = (((row >= start_h) & (row < start_h + crop_h) &
             (col >= start_w) & (col < start_w + crop_w))
            .astype(jnp.float32).reshape(1, HW))

    x2d = jnp.reshape(img, (num_rows, HW))       # lane-dense view, native dtype
    itemsize = x2d.dtype.itemsize
    row_bytes = HW * itemsize
    sub = max(8, 32 // max(itemsize, 1))         # native sublane tile: 8/16/32

    try:
        vmem_cap = int(pltpu.get_tpu_info().vmem_capacity_bytes)
    except Exception:                            # pragma: no cover - be conservative
        vmem_cap = 64 << 20
    # ~4 MiB blocks on 128 MiB-VMEM chips (v5e/v6e), ~2 MiB on v7x (64 MiB).
    budget = (4 << 20) if vmem_cap >= (96 << 20) else (2 << 20)

    if num_rows <= sub:
        tr = num_rows                            # block == full array dims
    else:
        tr = max(sub, (budget // max(row_bytes, 1)) // sub * sub)
        tr = min(tr, (num_rows // sub) * sub)
        # keep >= 2 grid steps so v7x's two TensorCores both get work and the
        # BlockSpec pipeline has steps to overlap DMA with compute
        if num_rows >= 2 * sub and pl.cdiv(num_rows, tr) < 2:
            tr = ((num_rows + 1) // 2 + sub - 1) // sub * sub
    grid = (pl.cdiv(num_rows, tr),)

    # 2x double-buffered in + out blocks + resident mask, with headroom.
    vmem_need = 4 * tr * row_bytes + 2 * (HW * 4) + (1 << 20)
    vmem_limit = int(min(max(vmem_need, 16 << 20),
                         max(vmem_cap - (8 << 20), 16 << 20)))

    kernel = functools.partial(_center_crop_keep_shape_kernel, shift=shift)

    out = pl.pallas_call(
        kernel,
        out_shape=jax.ShapeDtypeStruct((num_rows, HW), x2d.dtype),
        grid_spec=pltpu.PrefetchScalarGridSpec(
            num_scalar_prefetch=0,
            grid=grid,
            in_specs=[pl.BlockSpec((1, HW), lambda i: (0, 0)),    # resident mask
                      pl.BlockSpec((tr, HW), lambda i: (i, 0))],
            out_specs=pl.BlockSpec((tr, HW), lambda i: (i, 0)),
        ),
        compiler_params=pltpu.CompilerParams(
            dimension_semantics=("parallel",),
            vmem_limit_bytes=vmem_limit),
        cost_estimate=pl.CostEstimate(
            flops=0, transcendentals=0,
            bytes_accessed=2 * num_rows * row_bytes + HW * 4),
    )(mask, x2d)
    return jnp.reshape(out, img.shape)


class RandomCenterCrop:
    """JAX/Pallas port of the PyTorch RandomCenterCrop module."""

    def __init__(self, min_cropped_img_size: Union[int, Sequence[int]],
                 remain_shape: bool = True):
        if isinstance(min_cropped_img_size, int):
            self.min_cropped_img_size = (min_cropped_img_size,
                                         min_cropped_img_size)
        else:
            self.min_cropped_img_size = tuple(min_cropped_img_size)
        self.remain_shape = remain_shape

    def __call__(self, img):
        H, W = img.shape[-2], img.shape[-1]
        if (H < self.min_cropped_img_size[0]) or (W < self.min_cropped_img_size[1]):
            return Warning(
                "min_cropped_size is bigger than the image's original dimension")
        crop_h = int(np.random.randint(self.min_cropped_img_size[0], H))
        crop_w = int(np.random.randint(self.min_cropped_img_size[1], W))
        if not self.remain_shape:
            # plain center crop (shape-changing); host-static slice, no kernel needed
            top = int(round((H - crop_h) / 2.0))
            left = int(round((W - crop_w) / 2.0))
            return img[..., top:top + crop_h, left:left + crop_w]
        return random_center_crop_pallas(img, crop_h, crop_w)


def _reference_numpy(img_np, crop_h, crop_w):
    H, W = img_np.shape[-2], img_np.shape[-1]
    crop_top = int(round((H - crop_h) / 2.0))
    crop_left = int(round((W - crop_w) / 2.0))
    cropped = img_np[..., crop_top:crop_top + crop_h,
                     crop_left:crop_left + crop_w]
    out = np.zeros_like(img_np)
    start_h = (H - crop_h) // 2
    start_w = (W - crop_w) // 2
    out[..., start_h:start_h + crop_h, start_w:start_w + crop_w] = cropped
    return out


if __name__ == "__main__":
    B, C, H, W = 2, 4, 16, 16
    key = jax.random.PRNGKey(0)
    img = jax.random.normal(key, (B, C, H, W), dtype=jnp.float32)
    img_np = np.asarray(img)

    # 1) module-style path with host RNG (np.random.randint), like the spec
    np.random.seed(0)
    module = RandomCenterCrop(min_cropped_img_size=8, remain_shape=True)
    out = jax.block_until_ready(module(img))
    np.random.seed(0)
    ch = int(np.random.randint(8, H))
    cw = int(np.random.randint(8, W))
    np.testing.assert_allclose(np.asarray(out),
                               _reference_numpy(img_np, ch, cw),
                               rtol=0, atol=0)

    # 2) explicit crop sizes covering every (dh, dw) shift combination
    for ch, cw in [(13, 13), (13, 10), (12, 13), (8, 8), (15, 15)]:
        out = jax.block_until_ready(random_center_crop_pallas(img, ch, cw))
        np.testing.assert_allclose(np.asarray(out),
                                   _reference_numpy(img_np, ch, cw),
                                   rtol=0, atol=0)

    # 3) bigger batch*channel count -> multi-step grid (>=2 iterations)
    img_big = jax.random.normal(jax.random.PRNGKey(1), (4, 8, H, W),
                                dtype=jnp.float32)
    out = jax.block_until_ready(random_center_crop_pallas(img_big, 11, 14))
    np.testing.assert_allclose(np.asarray(out),
                               _reference_numpy(np.asarray(img_big), 11, 14),
                               rtol=0, atol=0)

    # 4) bf16 input exercises the dtype-native sublane rounding path
    img_bf16 = img.astype(jnp.bfloat16)
    out = jax.block_until_ready(random_center_crop_pallas(img_bf16, 13, 12))
    np.testing.assert_allclose(np.asarray(out).astype(np.float32),
                               _reference_numpy(
                                   np.asarray(img_bf16).astype(np.float32), 13, 12),
                               rtol=0, atol=0)

    print("KERNEL_OK")
</pallas_src>

<mosaic_0001>
module attributes {stable_mosaic.version = 11 : i64} {
  func.func @_center_crop_keep_shape_kernel(%arg0: i32, %arg1: memref<1x256xf32, #tpu.memory_space<vmem>>, %arg2: memref<8x256xf32, #tpu.memory_space<vmem>>, %arg3: memref<8x256xf32, #tpu.memory_space<vmem>>) attributes {dimension_semantics = [#tpu.dimension_semantics<parallel>], iteration_bounds = array<i64: 1>, scalar_prefetch = 0 : i64, scratch_operands = 0 : i64, tpu.core_type = #tpu.core_type<tc>, window_params = [{pipeline_mode = #tpu.pipeline_mode<synchronous>, transform_indices = @transform_0, window_bounds = array<i64: 1, 256>}, {transform_indices = @transform_1, window_bounds = array<i64: 8, 256>}, {transform_indices = @transform_2, window_bounds = array<i64: 8, 256>}]} {
    %c0 = arith.constant 0 : index
    %c0_0 = arith.constant 0 : index
    %0 = vector.load %arg2[%c0, %c0_0] : memref<8x256xf32, #tpu.memory_space<vmem>>, vector<8x256xf32>
    %c0_1 = arith.constant 0 : index
    %c0_2 = arith.constant 0 : index
    %1 = vector.load %arg1[%c0_1, %c0_2] : memref<1x256xf32, #tpu.memory_space<vmem>>, vector<1x256xf32>
    %cst = arith.constant 0.000000e+00 : f32
    %2 = vector.broadcast %cst : f32 to vector<1x256xf32>
    %3 = arith.cmpf ogt, %1, %2 : vector<1x256xf32>
    %4 = vector.shape_cast %3 : vector<1x256xi1> to vector<1x256xi1>
    %5 = vector.broadcast %4 : vector<1x256xi1> to vector<8x256xi1>
    %cst_3 = arith.constant 0.000000e+00 : f32
    %6 = vector.broadcast %cst_3 : f32 to vector<8x256xf32>
    %7 = arith.select %5, %0, %6 : vector<8x256xi1>, vector<8x256xf32>
    %c0_4 = arith.constant 0 : index
    %c0_5 = arith.constant 0 : index
    %8 = vector.load %arg3[%c0_4, %c0_5] : memref<8x256xf32, #tpu.memory_space<vmem>>, vector<8x256xf32>
    tpu.vector_store %arg3[%c0_4, %c0_5], %7 {strides = array<i32>} : memref<8x256xf32, #tpu.memory_space<vmem>>, vector<8x256xf32>,
    return
  }
  func.func @transform_0(%arg0: i32) -> (i32, i32) {
    %c0_i32 = arith.constant 0 : i32
    %c0_i32_0 = arith.constant 0 : i32
    %c0_i32_1 = arith.constant 0 : i32
    return %c0_i32, %c0_i32_0 : i32, i32
  }
  func.func @transform_1(%arg0: i32) -> (i32, i32) {
    %c0_i32 = arith.constant 0 : i32
    %c0_i32_0 = arith.constant 0 : i32
    return %arg0, %c0_i32 : i32, i32
  }
  func.func @transform_2(%arg0: i32) -> (i32, i32) {
    %c0_i32 = arith.constant 0 : i32
    %c0_i32_0 = arith.constant 0 : i32
    return %arg0, %c0_i32 : i32, i32
  }
}

</mosaic_0001>

<bundles_post_ra>
// kernel: tpu_custom_call.1
= control target key start
LH: loop header
LB: loop body
LE: loop exit
PB: predicated region body
PF: predicated region fallthrough
CT: control target
= control target key end

     0   :  { %7 = vsyncpa [#allocation3], 0  ;;  %s169_s0 = inlined_call_operand.hbm [shape: f32[1,256], index: 0, kind: input, shape index: {}]   ;;  %s170_s1 = inlined_call_operand.hbm [shape: f32[8,256], index: 1, kind: input, shape index: {}]   ;;  %s171_s2 = inlined_call_operand.hbm [shape: f32[8,256], index: 2, kind: output, shape index: {}]  }
   0x1   :  { %8 = vsyncpa [#allocation6], 0 }
   0x2   :  { %9 = vsyncpa [#allocation4], 0  ;;  %s141_s9 = smov [#allocation2]   ;;  %s142_s11 = smov [#allocation5]  }
   0x3   :  { %s16_s10 = sshll.u32 %s141_s9, 4  ;;  %s26_s12 = sshll.u32 %s142_s11, 4  ;;  %s17_s10 = int_to_ptr.vmem [resolvable:$true] %s16_s10  ;;  %s27_s12 = int_to_ptr.vmem [resolvable:$true] %s26_s12 }
   0x4   :  { %s83_s13 = scalar_lea.vmem %s17_s10, 32  ;;  %p88_p1 = scmp.lt.s32.totalorder %s17_s10, %s17_s10 }
   0x5   :  { %p84_p0 = scmp.ne.s32.totalorder %s17_s10, %s83_s13  ;;  %p89_p2 = scmp.lt.s32.totalorder %s83_s13, %s83_s13 }
   0x7   :  { %p90_p3 = por %p89_p2, %p88_p1 }
   0x9   :  { %p91_p4 = pnand %p90_p3, %p84_p0 }
   0xb   :  { %94 = shalt.err (!%p91_p4)
}
   0xc   :  { %19 = dma.hbm_to_vmem [thread:$0]  %s169_s0, 32, %s17_s10, [#allocation3]  }
   0xd   :  { %s103_s16 = scalar_lea.vmem %s27_s12, 256  ;;  %p108_p6 = scmp.lt.s32.totalorder %s27_s12, %s27_s12 }
   0xe   :  { %p104_p5 = scmp.ne.s32.totalorder %s27_s12, %s103_s16  ;;  %p109_p7 = scmp.lt.s32.totalorder %s103_s16, %s103_s16 }
  0x10   :  { %p110_p8 = por %p109_p7, %p108_p6 }
  0x12   :  { %p111_p9 = pnand %p110_p8, %p104_p5 }
  0x14   :  { %114 = shalt.err (!%p111_p9)
}
  0x15   :  { %29 = dma.hbm_to_vmem [thread:$0]  %s170_s1, 256, %s27_s12, [#allocation6]  }
  0x16   :  { %135 = dma.done.wait [#allocation3], 32  }
  0x17   :  { %136 = vsyncadd [#allocation3], 4294967264 }
  0x18   :  { %137 = dma.done.wait [#allocation6], 256  }
  0x19   :  { %138 = vsyncadd [#allocation6], 4294967040  ;;  %v41_v0 = vlaneseq  ;;  %v38_v4 = vld [vmem:[#allocation2] sm:$0x3]  ;;  %v143_v5 = vmov 0   ;;  %s144_s0 = smov [#allocation7]  }
  0x1a   :  { %vm39_vm0 = vcmp.gt.f32.partialorder %v38_v4, 0.0  ;;  %s61_s19 = sshll.u32 %s144_s0, 4  ;;  %v36_v7 = vld [vmem:[#allocation5] sm:$0xff]  ;;  %v37_v9 = vld [vmem:[#allocation5 + $0x8] sm:$0xff]  ;;  %s62_s19 = int_to_ptr.vmem [resolvable:$true] %s61_s19 }
  0x1b   :  { %v42_v1 = vshrl.u32 %v41_v0, 7  ;;  %v40_v6 = vsel %vm39_vm0, 1, %v143_v5  ;;  %s115_s1 = scalar_lea.vmem %s62_s19, 256  ;;  %p120_p11 = scmp.lt.s32.totalorder %s62_s19, %s62_s19 }
  0x1c   :  { %p116_p10 = scmp.ne.s32.totalorder %s62_s19, %s115_s1  ;;  %p121_p12 = scmp.lt.s32.totalorder %s115_s1, %s115_s1 }
  0x1d   :  { %v43_v2 = vsub.s32 0, %v42_v1  ;;  %v47_v3 = vsub.s32 1, %v42_v1 }
  0x1e   :  { %p122_p13 = por %p121_p12, %p120_p11 }
  0x1f   :  { %v44_v8 = vrot.slane %v40_v6, %v43_v2  ;;  %v48_v10 = vrot.slane %v40_v6, %v47_v3 }
  0x20   :  { %p123_p0 = pnand %p122_p13, %p116_p10 }
  0x21   :  { %vm49_vm1 = vcmp.eq.s32.totalorder %v44_v8, 1  ;;  %vm50_vm2 = vcmp.eq.s32.totalorder %v48_v10, 1 }
  0x22   :  { %v51_v11 = vsel %vm49_vm1, %v36_v7, 0.0  ;;  %v52_v12 = vsel %vm50_vm2, %v37_v9, 0.0 }
  0x23   :  { %53 = vst [vmem:[#allocation7] sm:$0xff] %v51_v11  ;;  %54 = vst [vmem:[#allocation7 + $0x8] sm:$0xff] %v52_v12 }
  0x24   :  { %126 = shalt.err (!%p123_p0)
}
  0x25   :  { %64 = dma.vmem_to_hbm [thread:$0]  %s62_s19, 256, %s171_s2, [#allocation4]  }
  0x26   :  { %139 = dma.done.wait [#allocation4], 256  }
  0x27   :  { %140 = vsyncadd [#allocation4], 4294967040 }
  0x28   :  { %68 = vsyncpa [#allocation3], 1 }
  0x29   :  { %69 = vsyncpa [#allocation6], 1 }
  0x2a   :  { %70 = vsyncpa [#allocation4], 1 }

</bundles_post_ra>
